<compile_context>
chip_gen: v5e
topology: v5e:2x2
jax: 0.10.0
libtpu: 0.0.40
codegen_flags: <defaults>
</compile_context>

<pallas_src>
import jax
import jax.numpy as jnp
from jax.experimental import pallas as pl
from jax.experimental.pallas import tpu as pltpu


def _make_value_encoder_kernel(k: int, d: int):
    """Kernel over one row tile.

    x_ref, m_ref : (TILE_R, k)      -- folded (b*l, k) inputs
    w_ref, b_ref : (1, d)           -- Linear(1, d) parameters
    o_ref        : (TILE_R, k*d)    -- lane-dense folded output
    with out[r, j*d + c] = (x[r, j] * W[c] + bias[c]) * mask[r, j]
    """
    def kernel(x_ref, m_ref, w_ref, b_ref, o_ref):
        w = w_ref[...]        # (1, d)
        bias = b_ref[...]     # (1, d)
        chunks = []
        for j in range(k):    # k is small and static -> unrolled at trace time
            xj = x_ref[:, j:j + 1]          # (TILE_R, 1)
            mj = m_ref[:, j:j + 1]          # (TILE_R, 1)
            chunks.append((xj * w + bias) * mj)   # (TILE_R, d), pure VPU
        # Build one full-width (TILE_R, k*d) value -> single unmasked lane-dense store.
        o_ref[...] = chunks[0] if k == 1 else jnp.concatenate(chunks, axis=-1)

    return kernel


def value_encoder_forward(x, non_pad_mask, weight, bias, *, tile_rows=512):
    """x, non_pad_mask: (b, l, k); weight: (D, 1); bias: (D,). Returns (b, l, k, D)."""
    b, l, k = x.shape
    d = weight.shape[0]
    rows = b * l
    cols = k * d

    # Folded, layout-identical views (reshapes are free).
    x2 = x.reshape(rows, k).astype(jnp.float32)
    m2 = non_pad_mask.reshape(rows, k).astype(jnp.float32)
    w_row = weight.reshape(1, d).astype(jnp.float32)   # (D, 1) -> (1, D)
    b_row = bias.reshape(1, d).astype(jnp.float32)

    # Biggest row tile that comfortably fits scoped VMEM with double buffering
    # (512 x 128 f32 output block ~ 256 KiB/buffer -> tiny vs any VMEM budget).
    tile_r = rows if rows <= tile_rows else tile_rows
    grid = (pl.cdiv(rows, tile_r),)

    out2 = pl.pallas_call(
        _make_value_encoder_kernel(k, d),
        out_shape=jax.ShapeDtypeStruct((rows, cols), jnp.float32),
        grid=grid,
        in_specs=[
            pl.BlockSpec((tile_r, k), lambda i: (i, 0)),   # x
            pl.BlockSpec((tile_r, k), lambda i: (i, 0)),   # mask
            pl.BlockSpec((1, d), lambda i: (0, 0)),        # weight (resident)
            pl.BlockSpec((1, d), lambda i: (0, 0)),        # bias   (resident)
        ],
        out_specs=pl.BlockSpec((tile_r, cols), lambda i: (i, 0)),
        compiler_params=pltpu.CompilerParams(
            dimension_semantics=("parallel",),             # shard rows across TCs (v7x)
        ),
    )(x2, m2, w_row, b_row)

    # Free reshape back to the module's output layout.
    return out2.reshape(b, l, k, d)


if __name__ == "__main__":
    # Small shapes consistent with the forward: x (b, l, k), output_dim D.
    B, L, K, D = 2, 8, 4, 32

    key = jax.random.PRNGKey(0)
    kx, km, kw, kb = jax.random.split(key, 4)

    x = jax.random.normal(kx, (B, L, K), dtype=jnp.float32)
    non_pad_mask = (jax.random.uniform(km, (B, L, K)) > 0.3).astype(jnp.float32)

    # Linear(1, D) parameters (PyTorch init is U(-1, 1) since fan_in = 1).
    weight = jax.random.uniform(kw, (D, 1), minval=-1.0, maxval=1.0, dtype=jnp.float32)
    bias = jax.random.uniform(kb, (D,), minval=-1.0, maxval=1.0, dtype=jnp.float32)

    # Plain-JAX reference.
    ref = (x[..., None] * weight.reshape(1, 1, 1, D) + bias.reshape(1, 1, 1, D)) \
          * non_pad_mask[..., None]

    # Run once with the default (single-block at these toy shapes) ...
    out = jax.block_until_ready(value_encoder_forward(x, non_pad_mask, weight, bias))
    assert out.shape == (B, L, K, D)
    assert jnp.allclose(out, ref, atol=1e-6), "mismatch vs reference (default tiling)"

    # ... and once with a small row tile to exercise the multi-step pipelined grid.
    out_tiled = jax.block_until_ready(
        value_encoder_forward(x, non_pad_mask, weight, bias, tile_rows=8))
    assert jnp.allclose(out_tiled, ref, atol=1e-6), "mismatch vs reference (tiled grid)"

    print("KERNEL_OK")
</pallas_src>

<mosaic_0001>
module attributes {stable_mosaic.version = 11 : i64} {
  func.func @kernel(%arg0: i32, %arg1: memref<16x4xf32, #tpu.memory_space<vmem>>, %arg2: memref<16x4xf32, #tpu.memory_space<vmem>>, %arg3: memref<1x32xf32, #tpu.memory_space<vmem>>, %arg4: memref<1x32xf32, #tpu.memory_space<vmem>>, %arg5: memref<16x128xf32, #tpu.memory_space<vmem>>) attributes {dimension_semantics = [#tpu.dimension_semantics<parallel>], iteration_bounds = array<i64: 1>, scalar_prefetch = 0 : i64, scratch_operands = 0 : i64, tpu.core_type = #tpu.core_type<tc>, window_params = [{transform_indices = @transform_0, window_bounds = array<i64: 16, 4>}, {transform_indices = @transform_1, window_bounds = array<i64: 16, 4>}, {pipeline_mode = #tpu.pipeline_mode<synchronous>, transform_indices = @transform_2, window_bounds = array<i64: 1, 32>}, {pipeline_mode = #tpu.pipeline_mode<synchronous>, transform_indices = @transform_3, window_bounds = array<i64: 1, 32>}, {transform_indices = @transform_4, window_bounds = array<i64: 16, 128>}]} {
    %c0 = arith.constant 0 : index
    %c0_0 = arith.constant 0 : index
    %0 = vector.load %arg3[%c0, %c0_0] : memref<1x32xf32, #tpu.memory_space<vmem>>, vector<1x32xf32>
    %c0_1 = arith.constant 0 : index
    %c0_2 = arith.constant 0 : index
    %1 = vector.load %arg4[%c0_1, %c0_2] : memref<1x32xf32, #tpu.memory_space<vmem>>, vector<1x32xf32>
    %c0_3 = arith.constant 0 : index
    %c0_4 = arith.constant 0 : index
    %2 = vector.load %arg1[%c0_3, %c0_4] : memref<16x4xf32, #tpu.memory_space<vmem>>, vector<16x1xf32>
    %c0_5 = arith.constant 0 : index
    %c0_6 = arith.constant 0 : index
    %3 = vector.load %arg2[%c0_5, %c0_6] : memref<16x4xf32, #tpu.memory_space<vmem>>, vector<16x1xf32>
    %4 = vector.broadcast %2 : vector<16x1xf32> to vector<16x32xf32>
    %5 = vector.broadcast %0 : vector<1x32xf32> to vector<16x32xf32>
    %6 = arith.mulf %4, %5 : vector<16x32xf32>
    %7 = vector.broadcast %1 : vector<1x32xf32> to vector<16x32xf32>
    %8 = arith.addf %6, %7 : vector<16x32xf32>
    %9 = vector.broadcast %3 : vector<16x1xf32> to vector<16x32xf32>
    %10 = arith.mulf %8, %9 : vector<16x32xf32>
    %c0_7 = arith.constant 0 : index
    %c1 = arith.constant 1 : index
    %11 = vector.load %arg1[%c0_7, %c1] : memref<16x4xf32, #tpu.memory_space<vmem>>, vector<16x1xf32>
    %c0_8 = arith.constant 0 : index
    %c1_9 = arith.constant 1 : index
    %12 = vector.load %arg2[%c0_8, %c1_9] : memref<16x4xf32, #tpu.memory_space<vmem>>, vector<16x1xf32>
    %13 = vector.broadcast %11 : vector<16x1xf32> to vector<16x32xf32>
    %14 = vector.broadcast %0 : vector<1x32xf32> to vector<16x32xf32>
    %15 = arith.mulf %13, %14 : vector<16x32xf32>
    %16 = vector.broadcast %1 : vector<1x32xf32> to vector<16x32xf32>
    %17 = arith.addf %15, %16 : vector<16x32xf32>
    %18 = vector.broadcast %12 : vector<16x1xf32> to vector<16x32xf32>
    %19 = arith.mulf %17, %18 : vector<16x32xf32>
    %c0_10 = arith.constant 0 : index
    %c2 = arith.constant 2 : index
    %20 = vector.load %arg1[%c0_10, %c2] : memref<16x4xf32, #tpu.memory_space<vmem>>, vector<16x1xf32>
    %c0_11 = arith.constant 0 : index
    %c2_12 = arith.constant 2 : index
    %21 = vector.load %arg2[%c0_11, %c2_12] : memref<16x4xf32, #tpu.memory_space<vmem>>, vector<16x1xf32>
    %22 = vector.broadcast %20 : vector<16x1xf32> to vector<16x32xf32>
    %23 = vector.broadcast %0 : vector<1x32xf32> to vector<16x32xf32>
    %24 = arith.mulf %22, %23 : vector<16x32xf32>
    %25 = vector.broadcast %1 : vector<1x32xf32> to vector<16x32xf32>
    %26 = arith.addf %24, %25 : vector<16x32xf32>
    %27 = vector.broadcast %21 : vector<16x1xf32> to vector<16x32xf32>
    %28 = arith.mulf %26, %27 : vector<16x32xf32>
    %c0_13 = arith.constant 0 : index
    %c3 = arith.constant 3 : index
    %29 = vector.load %arg1[%c0_13, %c3] : memref<16x4xf32, #tpu.memory_space<vmem>>, vector<16x1xf32>
    %c0_14 = arith.constant 0 : index
    %c3_15 = arith.constant 3 : index
    %30 = vector.load %arg2[%c0_14, %c3_15] : memref<16x4xf32, #tpu.memory_space<vmem>>, vector<16x1xf32>
    %31 = vector.broadcast %29 : vector<16x1xf32> to vector<16x32xf32>
    %32 = vector.broadcast %0 : vector<1x32xf32> to vector<16x32xf32>
    %33 = arith.mulf %31, %32 : vector<16x32xf32>
    %34 = vector.broadcast %1 : vector<1x32xf32> to vector<16x32xf32>
    %35 = arith.addf %33, %34 : vector<16x32xf32>
    %36 = vector.broadcast %30 : vector<16x1xf32> to vector<16x32xf32>
    %37 = arith.mulf %35, %36 : vector<16x32xf32>
    %38 = tpu.concatenate %10, %19, %28, %37 in 1 : vector<16x32xf32>, vector<16x32xf32>, vector<16x32xf32>, vector<16x32xf32> -> vector<16x128xf32>
    %c0_16 = arith.constant 0 : index
    %c0_17 = arith.constant 0 : index
    %39 = vector.load %arg5[%c0_16, %c0_17] : memref<16x128xf32, #tpu.memory_space<vmem>>, vector<16x128xf32>
    tpu.vector_store %arg5[%c0_16, %c0_17], %38 {strides = array<i32>} : memref<16x128xf32, #tpu.memory_space<vmem>>, vector<16x128xf32>,
    return
  }
  func.func @transform_0(%arg0: i32) -> (i32, i32) {
    %c0_i32 = arith.constant 0 : i32
    %c0_i32_0 = arith.constant 0 : i32
    return %arg0, %c0_i32 : i32, i32
  }
  func.func @transform_1(%arg0: i32) -> (i32, i32) {
    %c0_i32 = arith.constant 0 : i32
    %c0_i32_0 = arith.constant 0 : i32
    return %arg0, %c0_i32 : i32, i32
  }
  func.func @transform_2(%arg0: i32) -> (i32, i32) {
    %c0_i32 = arith.constant 0 : i32
    %c0_i32_0 = arith.constant 0 : i32
    %c0_i32_1 = arith.constant 0 : i32
    return %c0_i32, %c0_i32_0 : i32, i32
  }
  func.func @transform_3(%arg0: i32) -> (i32, i32) {
    %c0_i32 = arith.constant 0 : i32
    %c0_i32_0 = arith.constant 0 : i32
    %c0_i32_1 = arith.constant 0 : i32
    return %c0_i32, %c0_i32_0 : i32, i32
  }
  func.func @transform_4(%arg0: i32) -> (i32, i32) {
    %c0_i32 = arith.constant 0 : i32
    %c0_i32_0 = arith.constant 0 : i32
    return %arg0, %c0_i32 : i32, i32
  }
}

</mosaic_0001>

<bundles_post_ra>
// kernel: tpu_custom_call.1
= control target key start
LH: loop header
LB: loop body
LE: loop exit
PB: predicated region body
PF: predicated region fallthrough
CT: control target
= control target key end

     0   :  { %v227_v2 = vmov 1   ;;  %v228_v3 = vmov 0   ;;  %s285_s0 = inlined_call_operand.vmem [shape: f32[16,4], index: 0, kind: input, shape index: {}]   ;;  %s286_s1 = inlined_call_operand.vmem [shape: f32[16,4], index: 1, kind: input, shape index: {}]   ;;  %s287_s2 = inlined_call_operand.vmem [shape: f32[1,32], index: 2, kind: input, shape index: {}]   ;;  %s288_s3 = inlined_call_operand.vmem [shape: f32[1,32], index: 3, kind: input, shape index: {}]   ;;  %s289_s4 = inlined_call_operand.hbm [shape: f32[16,128], index: 4, kind: output, shape index: {}]  }
   0x1   :  { %v22_v0 = vld [vmem:[%s286_s1] sm:$0xff]  ;;  %187 = vset.pattern.permute.xlu2 %v227_v2  ;;  %186 = vset.pattern.permute.xlu1 %v228_v3 }
   0x2   :  { %v20_v1 = vld [vmem:[%s285_s0] sm:$0xff]  ;;  %185 = vset.pattern.permute.xlu0 %v228_v3  ;;  %46 = vperm.xlu1 %186, %v22_v0  }
   0x3   :  { %9 = vsyncpa [#allocation3], 0  ;;  %57 = vperm.xlu2 %187, %v20_v1   ;;  %26 = vperm.xlu0 %185, %v20_v1   ;;  %v23_v4 = vld [vmem:[%s286_s1 + $0x8] sm:$0xff]  ;;  %v229_v6 = vmov 2   ;;  %v230_v7 = vmov 3   ;;  %s231_s25 = smov 32  }
   0x4   :  { %v21_v5 = vld [vmem:[%s285_s0 + $0x8] sm:$0xff]  ;;  %v199_v10 = vld [vmem:[%s287_s2] ss:$0 sm:$0xff]  ;;  %s232_s2 = smov 64   ;;  %vm146_vm0 = vcmask 261120   ;;  %vm152_vm1 = vcmask 785408  }
   0x5   :  { %v200_v13 = vld [vmem:[%s288_s3] ss:$0 sm:$0xff]  ;;  %s233_s3 = smov 96   ;;  %vm149_vm2 = vcmask 523264   ;;  %s234_s26 = smov [#allocation2]  }
   0x6   :  { %s161_s27 = sshll.u32 %s234_s26, 4  ;;  %s163_s30 = sshll.u32 %s289_s4, 4  ;;  %s162_s27 = int_to_ptr.vmem [resolvable:$true] %s161_s27  ;;  %s164_s30 = int_to_ptr.hbm [resolvable:$true] %s163_s30 }
   0x7   :  { %s235_s5 = smov 128   ;;  %s236_s6 = smov 8  }
   0xa   :  { %51 = vperm.xlu1 %186, %v23_v4  }
   0xb   :  { %61 = vperm.xlu2 %187, %v21_v5   ;;  %31 = vperm.xlu0 %185, %v21_v5  }
  0x12   :  { %189 = vset.pattern.permute.xlu1 %v229_v6 }
  0x13   :  { %190 = vset.pattern.permute.xlu2 %v230_v7  ;;  %188 = vset.pattern.permute.xlu0 %v229_v6 }
  0x14   :  { %83 = vperm.xlu1 %189, %v21_v5   ;;  %101 = vperm.xlu2 %190, %v20_v1  }
  0x15   :  { %79 = vperm.xlu0 %188, %v20_v1  }
  0x1c   :  { %191 = vset.pattern.permute.xlu1 %v230_v7  ;;  %192 = vset.pattern.permute.xlu2 %v227_v2 }
  0x1d   :  { %193 = vset.pattern.permute.xlu0 %v227_v2  ;;  %105 = vperm.xlu1 %191, %v21_v5  }
  0x1e   :  { %69 = vperm.xlu2 %192, %v22_v0   ;;  %73 = vperm.xlu0 %193, %v23_v4  }
  0x25   :  { %194 = vset.pattern.permute.xlu1 %v229_v6 }
  0x26   :  { %91 = vperm.xlu1 %194, %v22_v0   ;;  %195 = vset.pattern.permute.xlu2 %v229_v6 }
  0x27   :  { %95 = vperm.xlu2 %195, %v23_v4   ;;  %198 = vset.pattern.permute.xlu0 %v230_v7 }
  0x2e   :  { %196 = vset.pattern.permute.xlu1 %v230_v7 }
  0x2f   :  { %113 = vperm.xlu1 %196, %v22_v0   ;;  %197 = vset.pattern.permute.xlu2 %v230_v7 }
  0x30   :  { %117 = vperm.xlu2 %197, %v23_v4  }
  0x5d   :  { %v58_v8 = vpop.permute.xlu2 %57 }
  0x5e   :  { %v64_v12 = vmul.f32 %v199_v10, %v58_v8 }
  0x60   :  { %v66_v16 = vadd.f32 %v200_v13, %v64_v12 }
  0x65   :  { %v62_v9 = vpop.permute.xlu2 %61 }
  0x66   :  { %v65_v32 = vmul.f32 %v199_v10, %v62_v9 }
  0x68   :  { %v67_v35 = vadd.f32 %v200_v13, %v65_v32 }
  0x6e   :  { %v102_v11 = vpop.permute.xlu2 %101 }
  0x6f   :  { %v108_v43 = vmul.f32 %v199_v10, %v102_v11 }
  0x71   :  { %v110_v46 = vadd.f32 %v200_v13, %v108_v43 }
  0x74   :  { %v47_v14 = vpop.permute.xlu1 %46 }
  0x75   :  { %v27_v15 = vpop.permute.xlu0 %26 }
  0x76   :  { %v37_v17 = vmul.f32 %v199_v10, %v27_v15 }
  0x78   :  { %v42_v18 = vadd.f32 %v200_v13, %v37_v17  ;;  %v70_v19 = vpop.permute.xlu2 %69 }
  0x79   :  { %v76_v20 = vmul.f32 %v70_v19, %v66_v16 }
  0x7a   :  { %v54_v21 = vmul.f32 %v47_v14, %v42_v18 }
  0x7b   :  { %124 = vrot.lane.b32.xlu0 %v76_v20, %s231_s25 }
  0x7c   :  { %v52_v22 = vpop.permute.xlu1 %51 }
  0x7d   :  { %v32_v23 = vpop.permute.xlu0 %31 }
  0x7e   :  { %v38_v24 = vmul.f32 %v199_v10, %v32_v23 }
  0x80   :  { %v43_v25 = vadd.f32 %v200_v13, %v38_v24 }
  0x81   :  { %v96_v30 = vpop.permute.xlu2 %95 }
  0x82   :  { %v55_v26 = vmul.f32 %v52_v22, %v43_v25 }
  0x86   :  { %v84_v27 = vpop.permute.xlu1 %83 }
  0x87   :  { %v87_v28 = vmul.f32 %v199_v10, %v84_v27  ;;  %v80_v29 = vpop.permute.xlu0 %79 }
  0x88   :  { %v86_v38 = vmul.f32 %v199_v10, %v80_v29 }
  0x89   :  { %v89_v31 = vadd.f32 %v200_v13, %v87_v28 }
  0x8a   :  { %v88_v39 = vadd.f32 %v200_v13, %v86_v38  ;;  %v118_v45 = vpop.permute.xlu2 %117 }
  0x8b   :  { %v99_v33 = vmul.f32 %v96_v30, %v89_v31 }
  0x8d   :  { %134 = vrot.lane.b32.xlu0 %v99_v33, %s232_s2 }
  0x8f   :  { %v106_v34 = vpop.permute.xlu1 %105 }
  0x90   :  { %v74_v36 = vpop.permute.xlu0 %73  ;;  %v109_v41 = vmul.f32 %v199_v10, %v106_v34 }
  0x91   :  { %v77_v37 = vmul.f32 %v74_v36, %v67_v35 }
  0x92   :  { %v111_v44 = vadd.f32 %v200_v13, %v109_v41 }
  0x93   :  { %126 = vrot.lane.b32.xlu1 %v77_v37, %s231_s25 }
  0x94   :  { %v121_v47 = vmul.f32 %v118_v45, %v111_v44 }
  0x98   :  { %v92_v40 = vpop.permute.xlu1 %91 }
  0x99   :  { %v98_v42 = vmul.f32 %v92_v40, %v88_v39 }
  0x9b   :  { %132 = vrot.lane.b32.xlu2 %v98_v42, %s232_s2 }
  0xa1   :  { %v114_v48 = vpop.permute.xlu1 %113 }
  0xa2   :  { %v120_v49 = vmul.f32 %v114_v48, %v110_v46 }
  0xa3   :  { %142 = vrot.lane.b32.xlu2 %v121_v47, %s233_s3 }
  0xa4   :  { %140 = vrot.lane.b32.xlu1 %v120_v49, %s233_s3 }
  0xed   :  { %v125_v51 = vpop.permute.xlu0 %124 }
  0xee   :  { %v147_v58 = vsel %vm146_vm0, %v54_v21, %v125_v51 }
  0xf5   :  { %v133_v50 = vpop.permute.xlu2 %132 }
  0xf6   :  { %v150_v59 = vsel %vm149_vm2, %v147_v58, %v133_v50 }
  0xfd   :  { %v143_v55 = vpop.permute.xlu2 %142 }
  0xff   :  { %v135_v53 = vpop.permute.xlu0 %134 }
 0x105   :  { %v127_v52 = vpop.permute.xlu1 %126 }
 0x106   :  { %v148_v54 = vsel %vm146_vm0, %v55_v26, %v127_v52 }
 0x107   :  { %v151_v56 = vsel %vm149_vm2, %v148_v54, %v135_v53 }
 0x108   :  { %v154_v57 = vsel %vm152_vm1, %v151_v56, %v143_v55 }
 0x109   :  { %156 = vst [vmem:[#allocation2 + $0x8] sm:$0xff] %v154_v57 }
 0x116   :  { %v141_v60 = vpop.permute.xlu1 %140 }
 0x117   :  { %v153_v61 = vsel %vm152_vm1, %v150_v59, %v141_v60 }
 0x118   :  { %155 = vst [vmem:[#allocation2] sm:$0xff] %v153_v61 }
 0x119   :  { %169 = dma.vmem_to_hbm [thread:$0]  %s162_s27, 256, %s164_s30, [#allocation3], %s235_s5, %s235_s5, %s236_s6  }
 0x11a   :  { %225 = dma.done.wait [#allocation3], 256  }
 0x11b   :  { %226 = vsyncadd [#allocation3], 4294967040 }
 0x11c   :  { %174 = vsyncpa [#allocation3], 1 }

</bundles_post_ra>
